<compile_context>
chip_gen: v6e
topology: v6e:2x2x1
jax: 0.10.0
libtpu: 0.0.40
codegen_flags: <defaults>
</compile_context>

<pallas_src>
import functools

import jax
import jax.numpy as jnp
from jax.experimental import pallas as pl
from jax.experimental.pallas import tpu as pltpu


_RESIDENT_XW_BUDGET = 12 << 20   # double-buffered bytes allowed for resident XW


# ---------------------------------------------------------------------------
# Kernels
# ---------------------------------------------------------------------------

def _feat_kernel(x_ref, w_ref, o_ref):
    """One row tile of the (cheap) feature transform: X_tile @ W."""
    o_ref[...] = jnp.dot(
        x_ref[...], w_ref[...], preferred_element_type=jnp.float32
    ).astype(o_ref.dtype)


def _layer1_kernel(a_ref, xw_ref, b1_ref, w2_ref, o_ref, acc_ref, *,
                   tk, xw_resident):
    """acc[i] = sum_k A[i,k] @ XW1[k]; finalize: out = relu(acc + b1) @ W2."""
    k = pl.program_id(1)

    @pl.when(k == 0)
    def _():
        acc_ref[...] = jnp.zeros_like(acc_ref)

    if xw_resident:
        start = pl.multiple_of(k * tk, tk)
        xw = xw_ref[pl.ds(start, tk), :]          # slice the resident operand
    else:
        xw = xw_ref[...]                          # streamed per-k tile
    acc_ref[...] += jnp.dot(a_ref[...], xw, preferred_element_type=jnp.float32)

    @pl.when(k == pl.num_programs(1) - 1)
    def _():
        h = jnp.maximum(acc_ref[...] + b1_ref[...], 0.0)   # bias + ReLU once
        hw2 = jnp.dot(h.astype(w2_ref.dtype), w2_ref[...],
                      preferred_element_type=jnp.float32)  # fused H @ W2
        o_ref[...] = hw2.astype(o_ref.dtype)


def _layer2_kernel(a_ref, hw2_ref, b2_ref, o_ref, *, tk, xw_resident):
    """out[i] = b2 + sum_k A[i,k] @ HW2[k]; accumulates in the f32 output."""
    k = pl.program_id(1)

    @pl.when(k == 0)
    def _():
        o_ref[...] = jnp.broadcast_to(b2_ref[...], o_ref.shape)

    if xw_resident:
        start = pl.multiple_of(k * tk, tk)
        xw = hw2_ref[pl.ds(start, tk), :]
    else:
        xw = hw2_ref[...]
    o_ref[...] += jnp.dot(a_ref[...], xw, preferred_element_type=jnp.float32)


# ---------------------------------------------------------------------------
# Wrappers
# ---------------------------------------------------------------------------

def _round_up(x, m):
    return (x + m - 1) // m * m


def _choose_tiles(n):
    """Return (n_pad, tm, tk) — lane-dense, sized for the VMEM/HBM roofline."""
    if n <= 1024:
        n_pad = _round_up(n, 128)          # lane-dense single tile
        return n_pad, n_pad, n_pad
    if n <= 4096:
        tm = tk = 1024
    else:
        tm, tk = 1024, 2048                # ~8 MiB double-buffered A stream
    n_pad = _round_up(n, tk)               # tk is a multiple of tm
    return n_pad, tm, tk                   # n_pad/tm >= 2 -> both v7x TCs busy


def _pad2(x, rows, cols):
    pr, pc = rows - x.shape[0], cols - x.shape[1]
    if pr or pc:
        x = jnp.pad(x, ((0, pr), (0, pc)))
    return x


def _vmem_limit(tm, tk, n_pad, f_mid, f_out, xw_resident, out_itemsize, has_acc):
    """Conservative scoped-VMEM request for one aggregation call."""
    a_bytes = 2 * tm * tk * 2                                   # A, bf16, 2 bufs
    xw_bytes = (2 * n_pad * f_mid * 2) if xw_resident else (2 * tk * f_mid * 2)
    out_bytes = 2 * tm * f_out * out_itemsize
    acc_bytes = tm * f_mid * 4 if has_acc else 0
    w_bytes = 2 * f_mid * f_out * 2
    est = a_bytes + xw_bytes + out_bytes + acc_bytes + w_bytes + (2 << 20)
    return int(min(max(est, 16 << 20), 48 << 20))               # fits v5e..v7x


def _feature_transform(x, w, tm, out_dtype):
    """X [N_pad, F_in] @ W [F_in, F_out] -> [N_pad, F_out], large row tiles."""
    n_pad, f_in = x.shape
    f_out = w.shape[1]
    return pl.pallas_call(
        _feat_kernel,
        out_shape=jax.ShapeDtypeStruct((n_pad, f_out), out_dtype),
        grid=(n_pad // tm,),
        in_specs=[
            pl.BlockSpec((tm, f_in), lambda i: (i, 0)),
            pl.BlockSpec((f_in, f_out), lambda i: (0, 0)),
        ],
        out_specs=pl.BlockSpec((tm, f_out), lambda i: (i, 0)),
        compiler_params=pltpu.CompilerParams(
            dimension_semantics=("parallel",)),
    )(x, w)


def _layer1_aggregate(a, xw1, b1, w2, tm, tk, out_dtype):
    """HW2 = relu(A_hat @ XW1 + b1) @ W2, tiled over (rows, K)."""
    n_pad = a.shape[0]
    h = xw1.shape[1]
    f_out = w2.shape[1]
    xw_resident = (2 * n_pad * h * xw1.dtype.itemsize) <= _RESIDENT_XW_BUDGET
    xw_spec = (pl.BlockSpec((n_pad, h), lambda i, k: (0, 0)) if xw_resident
               else pl.BlockSpec((tk, h), lambda i, k: (k, 0)))
    kernel = functools.partial(_layer1_kernel, tk=tk, xw_resident=xw_resident)
    vmem = _vmem_limit(tm, tk, n_pad, h, f_out, xw_resident,
                       out_itemsize=jnp.dtype(out_dtype).itemsize, has_acc=True)
    return pl.pallas_call(
        kernel,
        out_shape=jax.ShapeDtypeStruct((n_pad, f_out), out_dtype),
        grid=(n_pad // tm, n_pad // tk),
        in_specs=[
            pl.BlockSpec((tm, tk), lambda i, k: (i, k)),    # A_hat row/col tile
            xw_spec,                                        # XW1 (resident if fits)
            pl.BlockSpec((1, h), lambda i, k: (0, 0)),      # b1 (resident)
            pl.BlockSpec((h, f_out), lambda i, k: (0, 0)),  # W2 (resident)
        ],
        out_specs=pl.BlockSpec((tm, f_out), lambda i, k: (i, 0)),
        scratch_shapes=[pltpu.VMEM((tm, h), jnp.float32)],
        compiler_params=pltpu.CompilerParams(
            dimension_semantics=("parallel", "arbitrary"),
            vmem_limit_bytes=vmem),
    )(a, xw1, b1, w2)


def _layer2_aggregate(a, hw2, b2, tm, tk):
    """out = A_hat @ HW2 + b2, f32, accumulated directly in the output block."""
    n_pad = a.shape[0]
    f = hw2.shape[1]
    xw_resident = (2 * n_pad * f * hw2.dtype.itemsize) <= _RESIDENT_XW_BUDGET
    xw_spec = (pl.BlockSpec((n_pad, f), lambda i, k: (0, 0)) if xw_resident
               else pl.BlockSpec((tk, f), lambda i, k: (k, 0)))
    kernel = functools.partial(_layer2_kernel, tk=tk, xw_resident=xw_resident)
    vmem = _vmem_limit(tm, tk, n_pad, f, f, xw_resident,
                       out_itemsize=4, has_acc=False)
    return pl.pallas_call(
        kernel,
        out_shape=jax.ShapeDtypeStruct((n_pad, f), jnp.float32),
        grid=(n_pad // tm, n_pad // tk),
        in_specs=[
            pl.BlockSpec((tm, tk), lambda i, k: (i, k)),    # A_hat row/col tile
            xw_spec,                                        # HW2 (resident if fits)
            pl.BlockSpec((1, f), lambda i, k: (0, 0)),      # b2 (resident)
        ],
        out_specs=pl.BlockSpec((tm, f), lambda i, k: (i, 0)),
        compiler_params=pltpu.CompilerParams(
            dimension_semantics=("parallel", "arbitrary"),
            vmem_limit_bytes=vmem),
    )(a, hw2, b2)


def gcn_forward(a_hat, x, w1, b1, w2, b2):
    n, f_in = x.shape
    hidden = w1.shape[1]
    f_out = w2.shape[1]

    n_pad, tm, tk = _choose_tiles(n)
    f_in_pad = _round_up(f_in, 128)    # lane-dense X rows / sublane-dense W1
    h_pad = _round_up(hidden, 128)     # lane-dense hidden
    o_pad = _round_up(f_out, 128)      # lane-dense output (unmasked vst)

    bf16 = jnp.bfloat16
    # NOTE: A_hat in bf16 trades ~3 significant digits of the normalization
    # products for half the HBM traffic of the dominant [N,N] operand; fine
    # for the 5e-2 tolerance below.
    a_p = _pad2(a_hat, n_pad, n_pad).astype(bf16)
    x_p = _pad2(x, n_pad, f_in_pad).astype(bf16)
    w1_p = _pad2(w1, f_in_pad, h_pad).astype(bf16)
    w2_p = _pad2(w2, h_pad, o_pad).astype(bf16)
    b1_p = jnp.pad(b1, (0, h_pad - hidden)).reshape(1, h_pad).astype(jnp.float32)
    b2_p = jnp.pad(b2, (0, o_pad - f_out)).reshape(1, o_pad).astype(jnp.float32)

    # Row tile for the cheap feature transform, decoupled from aggregation tm.
    if n_pad <= 4096:
        tm_feat = n_pad
    else:
        tm_feat = 2048 if n_pad % 2048 == 0 else 1024

    # XW1 = X @ W1
    xw1 = _feature_transform(x_p, w1_p, tm_feat, bf16)

    # Layer 1 + fused layer-2 feature transform:
    #   HW2 = relu(A_hat @ XW1 + b1) @ W2     (W2 matmul in the finalize branch)
    # Padded rows of relu(acc + b1) may be nonzero; they are cancelled by the
    # zero-padded A columns in layer 2 and removed by the final slice.
    hw2 = _layer1_aggregate(a_p, xw1, b1_p, w2_p, tm, tk, bf16)

    # Layer 2 aggregation: out = A_hat @ HW2 + b2   (f32, accumulated in-place)
    out = _layer2_aggregate(a_p, hw2, b2_p, tm, tk)

    return out[:n, :f_out]


# ---------------------------------------------------------------------------
# Graph utilities (plain JAX glue)
# ---------------------------------------------------------------------------

def build_normalized_adjacency(edge_index, num_nodes):
    """Dense A_hat = D^-1/2 (A + I) D^-1/2 with GCNConv conventions."""
    row, col = edge_index[0], edge_index[1]
    loop = jnp.arange(num_nodes, dtype=edge_index.dtype)
    row = jnp.concatenate([row, loop])
    col = jnp.concatenate([col, loop])
    deg = jnp.zeros((num_nodes,), jnp.float32).at[col].add(1.0)
    dinv = jnp.where(deg > 0, 1.0 / jnp.sqrt(deg), 0.0)
    norm = dinv[row] * dinv[col]
    # A_hat[target, source] so (A_hat @ X)[i] aggregates messages into node i.
    a_hat = jnp.zeros((num_nodes, num_nodes), jnp.float32).at[col, row].add(norm)
    return a_hat


def glorot(key, shape):
    fan_in, fan_out = shape
    limit = jnp.sqrt(6.0 / (fan_in + fan_out))
    return jax.random.uniform(key, shape, jnp.float32, -limit, limit)


if __name__ == "__main__":
    num_nodes = 16
    num_inputs = 8
    hidden = 64
    num_outputs = 4
    num_edges = 32

    key = jax.random.PRNGKey(0)
    k_x, k_src, k_dst, k_w1, k_w2 = jax.random.split(key, 5)

    # Deterministic synthetic graph
    x = jax.random.normal(k_x, (num_nodes, num_inputs), jnp.float32)
    src = jax.random.randint(k_src, (num_edges,), 0, num_nodes, jnp.int32)
    dst = jax.random.randint(k_dst, (num_edges,), 0, num_nodes, jnp.int32)
    edge_index = jnp.stack([src, dst], axis=0)          # [2, E]

    # Deterministic parameter init (GCNConv: glorot weights, zero bias)
    w1 = glorot(k_w1, (num_inputs, hidden))
    b1 = jnp.zeros((hidden,), jnp.float32)
    w2 = glorot(k_w2, (hidden, num_outputs))
    b2 = jnp.zeros((num_outputs,), jnp.float32)

    a_hat = build_normalized_adjacency(edge_index, num_nodes)

    out = gcn_forward(a_hat, x, w1, b1, w2, b2)
    jax.block_until_ready(out)

    # Pure-JAX f32 reference check (kernel uses bf16 MXU inputs -> looser tol)
    ref_h = jnp.maximum(a_hat @ (x @ w1) + b1, 0.0)
    ref = a_hat @ (ref_h @ w2) + b2
    assert out.shape == (num_nodes, num_outputs)
    assert jnp.allclose(out, ref, atol=5e-2, rtol=5e-2), float(
        jnp.max(jnp.abs(out - ref)))

    print("KERNEL_OK")
</pallas_src>

<mosaic_0001>
module attributes {stable_mosaic.version = 11 : i64} {
  func.func @_feat_kernel(%arg0: i32, %arg1: memref<128x128xbf16, #tpu.memory_space<vmem>>, %arg2: memref<128x128xbf16, #tpu.memory_space<vmem>>, %arg3: memref<128x128xbf16, #tpu.memory_space<vmem>>) attributes {dimension_semantics = [#tpu.dimension_semantics<parallel>], iteration_bounds = array<i64: 1>, scalar_prefetch = 0 : i64, scratch_operands = 0 : i64, tpu.core_type = #tpu.core_type<tc>, window_params = [{transform_indices = @transform_0, window_bounds = array<i64: 128, 128>}, {pipeline_mode = #tpu.pipeline_mode<synchronous>, transform_indices = @transform_1, window_bounds = array<i64: 128, 128>}, {transform_indices = @transform_2, window_bounds = array<i64: 128, 128>}]} {
    %c0 = arith.constant 0 : index
    %c0_0 = arith.constant 0 : index
    %0 = vector.load %arg1[%c0, %c0_0] : memref<128x128xbf16, #tpu.memory_space<vmem>>, vector<128x128xbf16>
    %c0_1 = arith.constant 0 : index
    %c0_2 = arith.constant 0 : index
    %1 = vector.load %arg2[%c0_1, %c0_2] : memref<128x128xbf16, #tpu.memory_space<vmem>>, vector<128x128xbf16>
    %cst = arith.constant dense<0.000000e+00> : vector<128x128xf32>
    %2 = tpu.matmul %0, %1, %cst {dimension_numbers = #tpu.dot_dimension_numbers<[1], [0], [0], [1], [0, 0, 1, 1], [], []>} : vector<128x128xbf16>, vector<128x128xbf16>, vector<128x128xf32> -> vector<128x128xf32>
    %3 = arith.truncf %2 : vector<128x128xf32> to vector<128x128xbf16>
    %c0_3 = arith.constant 0 : index
    %c0_4 = arith.constant 0 : index
    %4 = vector.load %arg3[%c0_3, %c0_4] : memref<128x128xbf16, #tpu.memory_space<vmem>>, vector<128x128xbf16>
    tpu.vector_store %arg3[%c0_3, %c0_4], %3 {strides = array<i32>} : memref<128x128xbf16, #tpu.memory_space<vmem>>, vector<128x128xbf16>,
    return
  }
  func.func @transform_0(%arg0: i32) -> (i32, i32) {
    %c0_i32 = arith.constant 0 : i32
    %c0_i32_0 = arith.constant 0 : i32
    return %arg0, %c0_i32 : i32, i32
  }
  func.func @transform_1(%arg0: i32) -> (i32, i32) {
    %c0_i32 = arith.constant 0 : i32
    %c0_i32_0 = arith.constant 0 : i32
    %c0_i32_1 = arith.constant 0 : i32
    return %c0_i32, %c0_i32_0 : i32, i32
  }
  func.func @transform_2(%arg0: i32) -> (i32, i32) {
    %c0_i32 = arith.constant 0 : i32
    %c0_i32_0 = arith.constant 0 : i32
    return %arg0, %c0_i32 : i32, i32
  }
}

</mosaic_0001>

<bundles_post_ra>
// kernel: tpu_custom_call.1
= control target key start
LH: loop header
LB: loop body
LE: loop exit
PB: predicated region body
PF: predicated region fallthrough
CT: control target
= control target key end

     0   :  { %7 = vsyncpa [#allocation3], 0  ;;  %s648_s0 = inlined_call_operand.hbm [shape: bf16[128,128], index: 0, kind: input, shape index: {}]   ;;  %s649_s1 = inlined_call_operand.hbm [shape: bf16[128,128], index: 1, kind: input, shape index: {}]   ;;  %s650_s2 = inlined_call_operand.hbm [shape: bf16[128,128], index: 2, kind: output, shape index: {}]  }
   0x1   :  { %8 = vsyncpa [#allocation6], 0 }
   0x2   :  { %9 = vsyncpa [#allocation4], 0  ;;  %s610_s9 = smov [#allocation2]  }
   0x3   :  { %s15_s10 = sshll.u32 %s610_s9, 4  ;;  %s16_s10 = int_to_ptr.vmem [resolvable:$true] %s15_s10 }
   0x4   :  { %s552_s11 = scalar_lea.vmem %s16_s10, 1024  ;;  %p557_p1 = scmp.lt.s32.totalorder %s16_s10, %s16_s10 }
   0x5   :  { %p553_p0 = scmp.ne.s32.totalorder %s16_s10, %s552_s11  ;;  %p558_p2 = scmp.lt.s32.totalorder %s552_s11, %s552_s11 }
   0x7   :  { %p559_p3 = por %p558_p2, %p557_p1 }
   0x9   :  { %p560_p4 = pnand %p559_p3, %p553_p0 }
   0xb   :  { %563 = shalt.err (!%p560_p4)
}
   0xc   :  { %s611_s12 = smov 64   ;;  %s612_s13 = smov 4  }
   0xd   :  { %21 = dma.hbm_to_vmem [thread:$0]  %s648_s0, 1024, %s16_s10, [#allocation3], %s611_s12, %s611_s12, %s612_s13  }
   0xe   :  { %s613_s16 = smov [#allocation5]  }
   0xf   :  { %s27_s17 = sshll.u32 %s613_s16, 4  ;;  %s28_s17 = int_to_ptr.vmem [resolvable:$true] %s27_s17 }
  0x10   :  { %s572_s18 = scalar_lea.vmem %s28_s17, 1024  ;;  %p577_p6 = scmp.lt.s32.totalorder %s28_s17, %s28_s17 }
  0x11   :  { %p573_p5 = scmp.ne.s32.totalorder %s28_s17, %s572_s18  ;;  %p578_p7 = scmp.lt.s32.totalorder %s572_s18, %s572_s18 }
  0x13   :  { %p579_p8 = por %p578_p7, %p577_p6 }
  0x15   :  { %p580_p9 = pnand %p579_p8, %p573_p5 }
  0x17   :  { %583 = shalt.err (!%p580_p9)
}
  0x18   :  { %33 = dma.hbm_to_vmem [thread:$0]  %s649_s1, 1024, %s28_s17, [#allocation6], %s611_s12, %s611_s12, %s612_s13  }
  0x19   :  { %604 = dma.done.wait [#allocation3], 1024  }
  0x1a   :  { %605 = vsyncadd [#allocation3], 4294966272 }
  0x1b   :  { %606 = dma.done.wait [#allocation6], 1024  }
  0x1c   :  { %607 = vsyncadd [#allocation6], 4294966272  ;;  %v528_v0 = vld [vmem:[#allocation5 + $0x38] sm:$0xff]   ;;  %v529_v1 = vld [vmem:[#allocation5 + $0x30] sm:$0xff]   ;;  %s614_s0 = smov [#allocation7]  }
  0x1d   :  { %475 = vmatprep.subr.bf16.mxu0 %v528_v0  ;;  %507 = vmatprep.subr.bf16.mxu1 %v528_v0  ;;  %v530_v2 = vld [vmem:[#allocation5 + $0x28] sm:$0xff]   ;;  %v531_v3 = vld [vmem:[#allocation5 + $0x20] sm:$0xff]   ;;  %v532_v6 = vld [vmem:[#allocation5 + $0x18] sm:$0xff]   ;;  %s351_s1 = sshll.u32 %s614_s0, 4  ;;  %s352_s1 = int_to_ptr.vmem [resolvable:$true] %s351_s1 }
  0x1e   :  { %476 = vmatpush3.bf16.msra.mxu0 %v528_v0  ;;  %515 = vmatpush3.bf16.msra.mxu1 %v528_v0  ;;  %v536_v4 = vld [vmem:[#allocation2] sm:$0xff]   ;;  %v533_v7 = vld [vmem:[#allocation5 + $0x10] sm:$0xff]   ;;  %v534_v8 = vld [vmem:[#allocation5 + $0x8] sm:$0xff]   ;;  %s584_s21 = scalar_lea.vmem %s352_s1, 1024  ;;  %p589_p11 = scmp.lt.s32.totalorder %s352_s1, %s352_s1 }
  0x1f   :  { %477 = vmatprep.subr.bf16.mxu0 %v529_v1  ;;  %508 = vmatprep.subr.bf16.mxu1 %v529_v1  ;;  %v537_v5 = vld [vmem:[#allocation2 + $0x20] sm:$0xff]   ;;  %v538_v10 = vld [vmem:[#allocation2 + $0x8] sm:$0xff]   ;;  %v540_v12 = vld [vmem:[#allocation2 + $0x10] sm:$0xff]   ;;  %p585_p10 = scmp.ne.s32.totalorder %s352_s1, %s584_s21  ;;  %p590_p12 = scmp.lt.s32.totalorder %s584_s21, %s584_s21 }
  0x20   :  { %491 = vmatprep.mubr.bf16.mxu0 %v536_v4  ;;  %499 = vmatprep.mubr.bf16.mxu1 %v537_v5  ;;  %v535_v9 = vld [vmem:[#allocation5] sm:$0xff]   ;;  %v539_v11 = vld [vmem:[#allocation2 + $0x28] sm:$0xff]   ;;  %v541_v13 = vld [vmem:[#allocation2 + $0x30] sm:$0xff]  }
  0x21   :  { %v542_v14 = vld [vmem:[#allocation2 + $0x18] sm:$0xff]   ;;  %p591_p13 = por %p590_p12, %p589_p11 }
  0x22   :  { %478 = vmatpush3.bf16.msra.mxu0 %v529_v1  ;;  %516 = vmatpush3.bf16.msra.mxu1 %v529_v1  ;;  %v543_v15 = vld [vmem:[#allocation2 + $0x38] sm:$0xff]  }
  0x23   :  { %479 = vmatprep.subr.bf16.mxu0 %v530_v2  ;;  %509 = vmatprep.subr.bf16.mxu1 %v530_v2  ;;  %p592_p0 = pnand %p591_p13, %p585_p10 }
  0x26   :  { %480 = vmatpush3.bf16.msra.mxu0 %v530_v2  ;;  %517 = vmatpush3.bf16.msra.mxu1 %v530_v2 }
  0x27   :  { %481 = vmatprep.subr.bf16.mxu0 %v531_v3  ;;  %510 = vmatprep.subr.bf16.mxu1 %v531_v3 }
  0x2a   :  { %482 = vmatpush3.bf16.msra.mxu0 %v531_v3  ;;  %518 = vmatpush3.bf16.msra.mxu1 %v531_v3 }
  0x2b   :  { %483 = vmatprep.subr.bf16.mxu0 %v532_v6  ;;  %511 = vmatprep.subr.bf16.mxu1 %v532_v6 }
  0x2e   :  { %484 = vmatpush3.bf16.msra.mxu0 %v532_v6  ;;  %519 = vmatpush3.bf16.msra.mxu1 %v532_v6 }
  0x2f   :  { %485 = vmatprep.subr.bf16.mxu0 %v533_v7  ;;  %512 = vmatprep.subr.bf16.mxu1 %v533_v7 }
  0x32   :  { %486 = vmatpush3.bf16.msra.mxu0 %v533_v7  ;;  %520 = vmatpush3.bf16.msra.mxu1 %v533_v7 }
  0x33   :  { %487 = vmatprep.subr.bf16.mxu0 %v534_v8  ;;  %513 = vmatprep.subr.bf16.mxu1 %v534_v8 }
  0x36   :  { %488 = vmatpush3.bf16.msra.mxu0 %v534_v8  ;;  %521 = vmatpush3.bf16.msra.mxu1 %v534_v8 }
  0x37   :  { %489 = vmatprep.subr.bf16.mxu0 %v535_v9  ;;  %514 = vmatprep.subr.bf16.mxu1 %v535_v9 }
  0x3a   :  { %490 = vmatpush3.bf16.msra.mxu0 %v535_v9  ;;  %522 = vmatpush3.bf16.msra.mxu1 %v535_v9 }
  0x3d   :  { %492 = vmatmul.mubr.bf16.vlgmr.msra.gmra.mxu0 %v538_v10  ;;  %500 = vmatmul.mubr.bf16.vlgmr.msra.gmra.mxu1 %v539_v11 }
  0x3e   :  { %495 = vmatprep.mubr.bf16.mxu0 %v540_v12  ;;  %503 = vmatprep.mubr.bf16.mxu1 %v541_v13 }
  0x45   :  { %496 = vmatmul.mubr.bf16.gmra.mxu0 %v542_v14  ;;  %504 = vmatmul.mubr.bf16.gmra.mxu1 %v543_v15 }
  0xfd   :  { %v493_v16 = vpop.f32.mrf.mxu0  ;;  %v501_v17 = vpop.f32.mrf.mxu1 }
  0xff   :  { %v203_v18 = vpop.f32.mrf.mxu0  ;;  %v235_v19 = vpop.f32.mrf.mxu1 }
 0x101   :  { %v494_v20 = vpop.f32.mrf.mxu0  ;;  %v502_v21 = vpop.f32.mrf.mxu1 }
 0x102   :  { %v420_v22 = vpack.c.bf16 %v494_v20, %v493_v16  ;;  %v440_v23 = vpack.c.bf16 %v502_v21, %v501_v17 }
 0x103   :  { %v206_v24 = vpop.f32.mrf.mxu0  ;;  %v238_v25 = vpop.f32.mrf.mxu1 }
 0x104   :  { %452 = vst [vmem:[#allocation7 + $0x8] sm:$0xff] %v420_v22   ;;  %456 = vst [vmem:[#allocation7 + $0x28] sm:$0xff] %v440_v23   ;;  %v415_v26 = vpack.c.bf16 %v206_v24, %v203_v18  ;;  %v435_v27 = vpack.c.bf16 %v238_v25, %v235_v19 }
 0x105   :  { %v497_v28 = vpop.f32.mrf.mxu0  ;;  %v505_v29 = vpop.f32.mrf.mxu1 }
 0x106   :  { %416 = vst [vmem:[#allocation7] sm:$0xff] %v415_v26   ;;  %455 = vst [vmem:[#allocation7 + $0x20] sm:$0xff] %v435_v27  }
 0x107   :  { %v219_v30 = vpop.f32.mrf.mxu0  ;;  %v251_v31 = vpop.f32.mrf.mxu1 }
 0x109   :  { %v498_v32 = vpop.f32.mrf.mxu0  ;;  %v506_v33 = vpop.f32.mrf.mxu1 }
 0x10a   :  { %v430_v34 = vpack.c.bf16 %v498_v32, %v497_v28  ;;  %v450_v35 = vpack.c.bf16 %v506_v33, %v505_v29 }
 0x10b   :  { %v222_v36 = vpop.f32.mrf.mxu0  ;;  %v254_v37 = vpop.f32.mrf.mxu1 }
 0x10c   :  { %454 = vst [vmem:[#allocation7 + $0x18] sm:$0xff] %v430_v34   ;;  %458 = vst [vmem:[#allocation7 + $0x38] sm:$0xff] %v450_v35   ;;  %v425_v38 = vpack.c.bf16 %v222_v36, %v219_v30  ;;  %v445_v39 = vpack.c.bf16 %v254_v37, %v251_v31 }
 0x10e   :  { %453 = vst [vmem:[#allocation7 + $0x10] sm:$0xff] %v425_v38   ;;  %457 = vst [vmem:[#allocation7 + $0x30] sm:$0xff] %v445_v39  }
 0x10f   :  { %595 = shalt.err (!%p592_p0)
}
 0x110   :  { %357 = dma.vmem_to_hbm [thread:$0]  %s352_s1, 1024, %s650_s2, [#allocation4], %s611_s12, %s611_s12, %s612_s13  }
 0x111   :  { %608 = dma.done.wait [#allocation4], 1024  }
 0x112   :  { %609 = vsyncadd [#allocation4], 4294966272 }
 0x113   :  { %361 = vsyncpa [#allocation3], 1 }
 0x114   :  { %362 = vsyncpa [#allocation6], 1 }
 0x115   :  { %363 = vsyncpa [#allocation4], 1 }

</bundles_post_ra>
